<compile_context>
chip_gen: v6e
topology: v6e:2x2x1
jax: 0.10.0
libtpu: 0.0.40
codegen_flags: <defaults>
</compile_context>

<pallas_src>
import jax
import jax.numpy as jnp
from jax.experimental import pallas as pl
from jax.experimental.pallas import tpu as pltpu


def attention_kernel(x_ref, a_ref, o_ref):
    """x_ref: (TB, S, D), a_ref: (1, D) lane-dense, o_ref: (TB, D)."""
    x = x_ref[...]                                    # native dtype — no f32 copy of x
    a = a_ref[...].astype(x.dtype)                    # (1, D)

    # Attention scores: VPU multiply + cross-lane (XLU) reduction, f32 accumulation.
    s = jnp.sum(x * a[:, None, :], axis=-1, keepdims=True,
                dtype=jnp.float32)                    # (TB, S, 1)

    # Numerically-stable softmax over the sequence (sublane) axis.  Exact division
    # (no approx reciprocal) to stay within the reference tolerance.
    m = jnp.max(s, axis=1, keepdims=True)             # (TB, 1, 1)
    e = jnp.exp(s - m)
    p = e / jnp.sum(e, axis=1, keepdims=True)         # (TB, S, 1) f32

    # Attention-weighted sum over the sequence axis: multiply in the input dtype,
    # accumulate in f32, store a lane-dense (TB, D) slab (unmasked vector stores).
    o = jnp.sum(x * p.astype(x.dtype), axis=1, dtype=jnp.float32)   # (TB, D)
    o_ref[...] = o.astype(o_ref.dtype)


def _round_down8(n):
    return max(8, (n // 8) * 8)


def _round_up8(n):
    return ((n + 7) // 8) * 8


def _choose_batch_tile(B, S, D, itemsize, target_tile_bytes, vmem_budget_bytes):
    """Pick TB (multiple of 8): big enough to hide per-step overhead, small enough
    that the double-buffered x + out tiles fit the VMEM budget on every TPU gen."""
    row_bytes = S * D * itemsize                       # one batch row of x
    per_row = 2 * row_bytes + 2 * D * 4                # double-buffered x + out (conservative)
    avail = max(per_row, vmem_budget_bytes - 2 * 8 * 128 * 4 - (1 << 20))
    tb_cap = _round_down8(avail // per_row)            # VMEM-budget cap
    tb_target = _round_down8(max(1, target_tile_bytes // row_bytes))
    tb = min(tb_target, tb_cap)
    if tb >= B:
        # Whole batch fits in one tile.  Keep >=2 grid steps when the batch is big
        # enough so both v7x TensorCores get work; otherwise take it in one step.
        tb = B if B < 16 else max(8, _round_up8((B + 1) // 2))
    return tb


def attention_forward(x, attention, *,
                      target_tile_bytes=8 << 20, vmem_budget_bytes=40 << 20):
    """Pallas forward of `Attention.forward(x_in, reduction_dim=-2)` for 3-D x.

    x:         (B, S, D) — pooled over the sequence axis S (reduction_dim=-2 default).
    attention: (D, 1) or (D,) — the nn.Parameter.
    returns    (B, D).
    """
    B, S, D = x.shape
    a_row = jnp.reshape(attention, (1, D)).astype(x.dtype)   # lane-dense layout
    itemsize = x.dtype.itemsize

    TB = _choose_batch_tile(B, S, D, itemsize, target_tile_bytes, vmem_budget_bytes)

    xp = x
    if B < 8:
        # Tiny batch: pad up to one 8-row tile.  Padded zero rows get a uniform
        # softmax over zeros, contribute only to rows we drop below.
        TB = 8
        xp = jnp.pad(x, ((0, 8 - B), (0, 0), (0, 0)))
    Bp = xp.shape[0]
    num_steps = pl.cdiv(Bp, TB)
    # Ragged last tile (Bp % TB != 0): Pallas clamps the boundary-block DMA; unused
    # rows hold stale VMEM data that never crosses rows (softmax is per-row) and their
    # output rows are not written back, so no padded HBM copy of x is required.

    vmem_need = (2 * TB * S * D * itemsize     # double-buffered x tiles
                 + 2 * TB * D * itemsize       # double-buffered out tiles
                 + 2 * 8 * 128 * 4             # attention-vector tiles (padded)
                 + (2 << 20))                  # headroom
    vmem_limit = max(32 << 20, int(vmem_need))

    out = pl.pallas_call(
        attention_kernel,
        out_shape=jax.ShapeDtypeStruct((Bp, D), x.dtype),
        grid=(num_steps,),
        in_specs=[
            pl.BlockSpec((TB, S, D), lambda b: (b, 0, 0)),   # x batch tile
            pl.BlockSpec((1, D), lambda b: (0, 0)),          # attention row (full)
        ],
        out_specs=pl.BlockSpec((TB, D), lambda b: (b, 0)),   # lane-dense output slab
        compiler_params=pltpu.CompilerParams(
            dimension_semantics=("parallel",),               # v7x: both TCs split batch
            vmem_limit_bytes=vmem_limit),
    )(xp, a_row)
    return out[:B]


def reference_forward(x, attention):
    """Pure-JAX mirror of the PyTorch forward (default reduction_dim=-2, 3-D x)."""
    attn_score = jnp.matmul(x, jnp.reshape(attention, (-1, 1)))[..., 0]   # (B, S)
    attn_distrib = jax.nn.softmax(attn_score, axis=-1)[..., None]         # (B, S, 1)
    return jnp.sum(x * attn_distrib, axis=-2)                             # (B, D)


if __name__ == "__main__":
    key = jax.random.PRNGKey(0)
    kx, ka = jax.random.split(key)

    B, S, D = 2, 8, 128          # batch, seq, attention_size (lane-aligned feature dim)
    x = jax.random.normal(kx, (B, S, D), jnp.float32)
    # torch.nn.init.xavier_normal_ on a (D, 1) parameter: std = sqrt(2 / (D + 1)).
    attention = jax.random.normal(ka, (D, 1), jnp.float32) * jnp.sqrt(2.0 / (D + 1))

    out = jax.block_until_ready(attention_forward(x, attention))
    assert out.shape == (B, D)

    ref = reference_forward(x, attention)
    if not jnp.allclose(out, ref, atol=1e-4, rtol=1e-4):
        raise AssertionError(
            f"kernel/reference mismatch, max abs diff = "
            f"{float(jnp.max(jnp.abs(out - ref)))}")

    print("KERNEL_OK")
</pallas_src>

<mosaic_0001>
module attributes {stable_mosaic.version = 11 : i64} {
  func.func @attention_kernel(%arg0: i32, %arg1: memref<8x8x128xf32, #tpu.memory_space<vmem>>, %arg2: memref<1x128xf32, #tpu.memory_space<vmem>>, %arg3: memref<8x128xf32, #tpu.memory_space<vmem>>) attributes {dimension_semantics = [#tpu.dimension_semantics<parallel>], iteration_bounds = array<i64: 1>, scalar_prefetch = 0 : i64, scratch_operands = 0 : i64, tpu.core_type = #tpu.core_type<tc>, window_params = [{transform_indices = @transform_0, window_bounds = array<i64: 8, 8, 128>}, {pipeline_mode = #tpu.pipeline_mode<synchronous>, transform_indices = @transform_1, window_bounds = array<i64: 1, 128>}, {transform_indices = @transform_2, window_bounds = array<i64: 8, 128>}]} {
    %c0 = arith.constant 0 : index
    %c0_0 = arith.constant 0 : index
    %c0_1 = arith.constant 0 : index
    %0 = vector.load %arg1[%c0, %c0_0, %c0_1] : memref<8x8x128xf32, #tpu.memory_space<vmem>>, vector<8x8x128xf32>
    %c0_2 = arith.constant 0 : index
    %c0_3 = arith.constant 0 : index
    %1 = vector.load %arg2[%c0_2, %c0_3] : memref<1x128xf32, #tpu.memory_space<vmem>>, vector<1x128xf32>
    %2 = vector.shape_cast %1 : vector<1x128xf32> to vector<1x1x128xf32>
    %3 = vector.broadcast %2 : vector<1x1x128xf32> to vector<8x8x128xf32>
    %4 = arith.mulf %0, %3 : vector<8x8x128xf32>
    %cst = arith.constant dense<0.000000e+00> : vector<8x8xf32>
    %5 = vector.multi_reduction <add>, %4, %cst [2] : vector<8x8x128xf32> to vector<8x8xf32>
    %6 = vector.shape_cast %5 : vector<8x8xf32> to vector<8x8x1xf32>
    %cst_4 = arith.constant dense<0xFF800000> : vector<8x1xf32>
    %7 = vector.multi_reduction <maximumf>, %6, %cst_4 [1] : vector<8x8x1xf32> to vector<8x1xf32>
    %8 = vector.shape_cast %7 : vector<8x1xf32> to vector<8x1x1xf32>
    %9 = vector.broadcast %8 : vector<8x1x1xf32> to vector<8x8x1xf32>
    %10 = arith.subf %6, %9 : vector<8x8x1xf32>
    %11 = math.exp %10 : vector<8x8x1xf32>
    %cst_5 = arith.constant dense<0.000000e+00> : vector<8x1xf32>
    %12 = vector.multi_reduction <add>, %11, %cst_5 [1] : vector<8x8x1xf32> to vector<8x1xf32>
    %13 = vector.shape_cast %12 : vector<8x1xf32> to vector<8x1x1xf32>
    %14 = vector.broadcast %13 : vector<8x1x1xf32> to vector<8x8x1xf32>
    %15 = arith.divf %11, %14 : vector<8x8x1xf32>
    %16 = vector.broadcast %15 : vector<8x8x1xf32> to vector<8x8x128xf32>
    %17 = arith.mulf %0, %16 : vector<8x8x128xf32>
    %cst_6 = arith.constant dense<0.000000e+00> : vector<8x128xf32>
    %18 = vector.multi_reduction <add>, %17, %cst_6 [1] : vector<8x8x128xf32> to vector<8x128xf32>
    %c0_7 = arith.constant 0 : index
    %c0_8 = arith.constant 0 : index
    %19 = vector.load %arg3[%c0_7, %c0_8] : memref<8x128xf32, #tpu.memory_space<vmem>>, vector<8x128xf32>
    tpu.vector_store %arg3[%c0_7, %c0_8], %18 {strides = array<i32>} : memref<8x128xf32, #tpu.memory_space<vmem>>, vector<8x128xf32>,
    return
  }
  func.func @transform_0(%arg0: i32) -> (i32, i32, i32) {
    %c0_i32 = arith.constant 0 : i32
    %c0_i32_0 = arith.constant 0 : i32
    %c0_i32_1 = arith.constant 0 : i32
    return %arg0, %c0_i32, %c0_i32_0 : i32, i32, i32
  }
  func.func @transform_1(%arg0: i32) -> (i32, i32) {
    %c0_i32 = arith.constant 0 : i32
    %c0_i32_0 = arith.constant 0 : i32
    %c0_i32_1 = arith.constant 0 : i32
    return %c0_i32, %c0_i32_0 : i32, i32
  }
  func.func @transform_2(%arg0: i32) -> (i32, i32) {
    %c0_i32 = arith.constant 0 : i32
    %c0_i32_0 = arith.constant 0 : i32
    return %arg0, %c0_i32 : i32, i32
  }
}

</mosaic_0001>

<bundles_post_ra>
// kernel: tpu_custom_call.1
= control target key start
LH: loop header
LB: loop body
LE: loop exit
PB: predicated region body
PF: predicated region fallthrough
CT: control target
= control target key end

     0   :  { %7 = vsyncpa [#allocation3], 0  ;;  %s477_s0 = inlined_call_operand.hbm [shape: f32[8,8,128], index: 0, kind: input, shape index: {}]   ;;  %s478_s1 = inlined_call_operand.vmem [shape: f32[1,128], index: 1, kind: input, shape index: {}]   ;;  %s479_s2 = inlined_call_operand.hbm [shape: f32[8,128], index: 2, kind: output, shape index: {}]  }
   0x1   :  { %8 = vsyncpa [#allocation4], 0  ;;  %s377_s9 = smov [#allocation2]  }
   0x2   :  { %s14_s10 = sshll.u32 %s377_s9, 4  ;;  %s15_s10 = int_to_ptr.vmem [resolvable:$true] %s14_s10 }
   0x3   :  { %s341_s11 = scalar_lea.vmem %s15_s10, 1024  ;;  %p346_p1 = scmp.lt.s32.totalorder %s15_s10, %s15_s10 }
   0x4   :  { %p342_p0 = scmp.ne.s32.totalorder %s15_s10, %s341_s11  ;;  %p347_p2 = scmp.lt.s32.totalorder %s341_s11, %s341_s11 }
   0x6   :  { %p348_p3 = por %p347_p2, %p346_p1 }
   0x8   :  { %p349_p4 = pnand %p348_p3, %p342_p0 }
   0xa   :  { %352 = shalt.err (!%p349_p4)
}
   0xb   :  { %s378_s12 = smov 128   ;;  %s379_s13 = smov 8  }
   0xc   :  { %20 = dma.hbm_to_vmem [thread:$0]  %s477_s0, 1024, %s15_s10, [#allocation3], %s378_s12, %s378_s12, %s379_s13  }
   0xd   :  { %373 = dma.done.wait [#allocation3], 1024  }
   0xe   :  { %374 = vsyncadd [#allocation3], 4294966272  ;;  %v399_v0 = vld [vmem:[#allocation2 + $0x10] sm:$0xff]  ;;  %v296_v1 = vld [vmem:[%s478_s1] ss:$0 sm:$0xff]  ;;  %vm265_vm0 = vcmask 1041409  }
   0xf   :  { %v404_v2 = vld [vmem:[#allocation2] sm:$0xff]  ;;  %v43_v3 = vmul.f32 %v296_v1, %v399_v0  ;;  %v408_v5 = vld [vmem:[#allocation2 + $0x18] sm:$0xff]  ;;  %v410_v6 = vld [vmem:[#allocation2 + $0x8] sm:$0xff]  ;;  %vm267_vm1 = vcmask 1042434   ;;  %vm269_vm2 = vcmask 1043459   ;;  %vm271_vm3 = vcmask 1044484  }
  0x10   :  { %v41_v4 = vmul.f32 %v296_v1, %v404_v2  ;;  %v44_v7 = vmul.f32 %v296_v1, %v408_v5  ;;  %v42_v8 = vmul.f32 %v296_v1, %v410_v6  ;;  %v414_v9 = vld [vmem:[#allocation2 + $0x28] sm:$0xff]  ;;  %v416_v10 = vld [vmem:[#allocation2 + $0x20] sm:$0xff]  ;;  %v420_v13 = vld [vmem:[#allocation2 + $0x38] sm:$0xff]  ;;  %vm273_vm4 = vcmask 1045509   ;;  %s380_s0 = smov [#allocation5]  }
  0x11   :  { %53 = vadd.xlane.f32.xlu1 %v43_v3  ;;  %v46_v11 = vmul.f32 %v296_v1, %v414_v9  ;;  %v45_v12 = vmul.f32 %v296_v1, %v416_v10  ;;  %v422_v14 = vld [vmem:[#allocation2 + $0x30] sm:$0xff]  ;;  %v48_v15 = vmul.f32 %v296_v1, %v420_v13  ;;  %vm275_vm5 = vcmask 1046534   ;;  %s287_s1 = sshll.u32 %s380_s0, 4  ;;  %s288_s1 = int_to_ptr.vmem [resolvable:$true] %s287_s1 }
  0x12   :  { %49 = vadd.xlane.f32.xlu0 %v41_v4  ;;  %v47_v16 = vmul.f32 %v296_v1, %v422_v14  ;;  %vm277_vm6 = vcmask 1047559   ;;  %s353_s18 = scalar_lea.vmem %s288_s1, 128  ;;  %p358_p6 = scmp.lt.s32.totalorder %s288_s1, %s288_s1 }
  0x13   :  { %p354_p5 = scmp.ne.s32.totalorder %s288_s1, %s353_s18  ;;  %p359_p7 = scmp.lt.s32.totalorder %s353_s18, %s353_s18 }
  0x15   :  { %55 = vadd.xlane.f32.xlu1 %v44_v7  ;;  %p360_p8 = por %p359_p7, %p358_p6 }
  0x16   :  { %51 = vadd.xlane.f32.xlu0 %v42_v8 }
  0x17   :  { %p361_p9 = pnand %p360_p8, %p354_p5 }
  0x19   :  { %59 = vadd.xlane.f32.xlu1 %v46_v11 }
  0x1a   :  { %57 = vadd.xlane.f32.xlu0 %v45_v12 }
  0x1d   :  { %63 = vadd.xlane.f32.xlu1 %v48_v15 }
  0x1e   :  { %61 = vadd.xlane.f32.xlu0 %v47_v16 }
  0x9a   :  { %v54_v17 = vpop.xlane.xlu1 %53 }
  0x9b   :  { %v50_v18 = vpop.xlane.xlu0 %49  ;;  %v77_v19 = vrot.slane %v54_v17, 4 }
  0x9c   :  { %v65_v20 = vrot.slane %v50_v18, 4 }
  0x9d   :  { %v78_v21 = vmax.f32 %v54_v17, %v77_v19 }
  0x9e   :  { %v66_v22 = vmax.f32 %v50_v18, %v65_v20  ;;  %v56_v23 = vpop.xlane.xlu1 %55 }
  0x9f   :  { %v52_v24 = vpop.xlane.xlu0 %51  ;;  %v79_v25 = vrot.slane %v78_v21, 2  ;;  %v83_v27 = vrot.slane %v56_v23, 4 }
  0xa0   :  { %v67_v26 = vrot.slane %v66_v22, 2  ;;  %v71_v28 = vrot.slane %v52_v24, 4 }
  0xa1   :  { %v80_v29 = vmax.f32 %v78_v21, %v79_v25  ;;  %v84_v31 = vmax.f32 %v56_v23, %v83_v27 }
  0xa2   :  { %v68_v30 = vmax.f32 %v66_v22, %v67_v26  ;;  %v72_v32 = vmax.f32 %v52_v24, %v71_v28  ;;  %v60_v33 = vpop.xlane.xlu1 %59 }
  0xa3   :  { %v58_v34 = vpop.xlane.xlu0 %57  ;;  %v81_v35 = vrot.slane %v80_v29, 1  ;;  %v85_v37 = vrot.slane %v84_v31, 2  ;;  %v95_v39 = vrot.slane %v60_v33, 4 }
  0xa4   :  { %v69_v36 = vrot.slane %v68_v30, 1  ;;  %v73_v38 = vrot.slane %v72_v32, 2  ;;  %v89_v40 = vrot.slane %v58_v34, 4 }
  0xa5   :  { %v82_v41 = vmax.f32 %v80_v29, %v81_v35  ;;  %v86_v43 = vmax.f32 %v84_v31, %v85_v37  ;;  %v96_v45 = vmax.f32 %v60_v33, %v95_v39 }
  0xa6   :  { %v70_v42 = vmax.f32 %v68_v30, %v69_v36  ;;  %v74_v44 = vmax.f32 %v72_v32, %v73_v38  ;;  %v90_v46 = vmax.f32 %v58_v34, %v89_v40  ;;  %v64_v47 = vpop.xlane.xlu1 %63 }
  0xa7   :  { %v62_v48 = vpop.xlane.xlu0 %61  ;;  %v115_v49 = vsub.f32 %v54_v17, %v82_v41  ;;  %v87_v51 = vrot.slane %v86_v43, 1  ;;  %v97_v53 = vrot.slane %v96_v45, 2  ;;  %v107_v55 = vrot.slane %v64_v47, 4 }
  0xa8   :  { %v113_v50 = vsub.f32 %v50_v18, %v70_v42  ;;  %v75_v52 = vrot.slane %v74_v44, 1  ;;  %v91_v54 = vrot.slane %v90_v46, 2  ;;  %v101_v56 = vrot.slane %v62_v48, 4 }
  0xa9   :  { %v125_v57 = vmul.f32 1.442695, %v115_v49  ;;  %v88_v59 = vmax.f32 %v86_v43, %v87_v51  ;;  %v98_v61 = vmax.f32 %v96_v45, %v97_v53  ;;  %v108_v63 = vmax.f32 %v64_v47, %v107_v55 }
  0xaa   :  { %v121_v58 = vmul.f32 1.442695, %v113_v50  ;;  %v76_v60 = vmax.f32 %v74_v44, %v75_v52  ;;  %v92_v62 = vmax.f32 %v90_v46, %v91_v54  ;;  %v102_v1 = vmax.f32 %v62_v48, %v101_v56 }
  0xab   :  { %301 = vpow2.f32 %v125_v57  ;;  %v116_v3 = vsub.f32 %v56_v23, %v88_v59  ;;  %v99_v7 = vrot.slane %v98_v61, 1  ;;  %v109_v11 = vrot.slane %v108_v63, 2 }
  0xac   :  { %v114_v4 = vsub.f32 %v52_v24, %v76_v60  ;;  %303 = vpow2.f32 %v121_v58  ;;  %v93_v8 = vrot.slane %v92_v62, 1  ;;  %v103_v16 = vrot.slane %v102_v1, 2 }
  0xad   :  { %v127_v12 = vmul.f32 1.442695, %v116_v3  ;;  %v100_v17 = vmax.f32 %v98_v61, %v99_v7  ;;  %v110_v19 = vmax.f32 %v108_v63, %v109_v11 }
  0xae   :  { %v123_v15 = vmul.f32 1.442695, %v114_v4  ;;  %v94_v18 = vmax.f32 %v92_v62, %v93_v8  ;;  %v104_v20 = vmax.f32 %v102_v1, %v103_v16 }
  0xaf   :  { %305 = vpow2.f32 %v127_v12  ;;  %v118_v21 = vsub.f32 %v60_v33, %v100_v17  ;;  %v111_v25 = vrot.slane %v110_v19, 1 }
  0xb0   :  { %307 = vpow2.f32 %v123_v15  ;;  %v117_v22 = vsub.f32 %v58_v34, %v94_v18  ;;  %v105_v26 = vrot.slane %v104_v20, 1 }
  0xb1   :  { %v131_v27 = vmul.f32 1.442695, %v118_v21  ;;  %v112_v24 = vmax.f32 %v110_v19, %v111_v25 }
  0xb2   :  { %v129_v23 = vmul.f32 1.442695, %v117_v22  ;;  %v106_v28 = vmax.f32 %v104_v20, %v105_v26 }
  0xb3   :  { %309 = vpow2.f32 %v131_v27  ;;  %v120_v29 = vsub.f32 %v64_v47, %v112_v24 }
  0xb4   :  { %311 = vpow2.f32 %v129_v23  ;;  %v119_v30 = vsub.f32 %v62_v48, %v106_v28 }
  0xb5   :  { %v135_v31 = vmul.f32 1.442695, %v120_v29 }
  0xb6   :  { %v133_v32 = vmul.f32 1.442695, %v119_v30 }
  0xb7   :  { %313 = vpow2.f32 %v135_v31 }
  0xb8   :  { %v426_v35 = vpop.eup %301  ;;  %315 = vpow2.f32 %v133_v32 }
  0xb9   :  { %v428_v36 = vpop.eup %303  ;;  %v149_v33 = vrot.slane %v426_v35, 4 }
  0xba   :  { %v137_v34 = vrot.slane %v428_v36, 4 }
  0xbb   :  { %v150_v37 = vadd.f32 %v426_v35, %v149_v33 }
  0xbc   :  { %v433_v38 = vpop.eup %305  ;;  %v138_v39 = vadd.f32 %v428_v36, %v137_v34 }
  0xbd   :  { %v436_v40 = vpop.eup %307  ;;  %v151_v41 = vrot.slane %v150_v37, 2  ;;  %v155_v42 = vrot.slane %v433_v38, 4 }
  0xbe   :  { %v139_v43 = vrot.slane %v138_v39, 2  ;;  %v143_v44 = vrot.slane %v436_v40, 4 }
  0xbf   :  { %v152_v45 = vadd.f32 %v151_v41, %v150_v37  ;;  %v156_v46 = vadd.f32 %v433_v38, %v155_v42 }
  0xc0   :  { %v140_v47 = vadd.f32 %v139_v43, %v138_v39  ;;  %v144_v48 = vadd.f32 %v436_v40, %v143_v44  ;;  %v442_v49 = vpop.eup %309 }
  0xc1   :  { %v153_v50 = vrot.slane %v152_v45, 1  ;;  %v157_v51 = vrot.slane %v156_v46, 2  ;;  %v444_v52 = vpop.eup %311  ;;  %v167_v55 = vrot.slane %v442_v49, 4 }
  0xc2   :  { %v141_v53 = vrot.slane %v140_v47, 1  ;;  %v145_v54 = vrot.slane %v144_v48, 2  ;;  %v161_v58 = vrot.slane %v444_v52, 4 }
  0xc3   :  { %v154_v56 = vadd.f32 %v153_v50, %v152_v45  ;;  %v158_v57 = vadd.f32 %v157_v51, %v156_v46  ;;  %v168_v61 = vadd.f32 %v442_v49, %v167_v55 }
  0xc4   :  { %v142_v59 = vadd.f32 %v141_v53, %v140_v47  ;;  %v146_v60 = vadd.f32 %v145_v54, %v144_v48  ;;  %v449_v62 = vpop.eup %313  ;;  %v162_v1 = vadd.f32 %v444_v52, %v161_v58 }
  0xc5   :  { %v159_v63 = vrot.slane %v158_v57, 1  ;;  %317 = vrcp.f32 %v154_v56  ;;  %v452_v3 = vpop.eup %315  ;;  %v169_v7 = vrot.slane %v168_v61, 2  ;;  %v179_v8 = vrot.slane %v449_v62, 4 }
  0xc6   :  { %319 = vrcp.f32 %v142_v59  ;;  %v147_v4 = vrot.slane %v146_v60, 1  ;;  %v163_v11 = vrot.slane %v162_v1, 2  ;;  %v173_v12 = vrot.slane %v452_v3, 4 }
  0xc7   :  { %v160_v15 = vadd.f32 %v159_v63, %v158_v57  ;;  %v170_v17 = vadd.f32 %v169_v7, %v168_v61  ;;  %v180_v18 = vadd.f32 %v449_v62, %v179_v8 }
  0xc8   :  { %v148_v16 = vadd.f32 %v147_v4, %v146_v60  ;;  %v164_v19 = vadd.f32 %v163_v11, %v162_v1  ;;  %v174_v20 = vadd.f32 %v452_v3, %v173_v12 }
  0xc9   :  { %321 = vrcp.f32 %v160_v15  ;;  %v171_v21 = vrot.slane %v170_v17, 1  ;;  %v181_v22 = vrot.slane %v180_v18, 2 }
  0xca   :  { %323 = vrcp.f32 %v148_v16  ;;  %v165_v25 = vrot.slane %v164_v19, 1  ;;  %v175_v26 = vrot.slane %v174_v20, 2 }
  0xcb   :  { %v172_v27 = vadd.f32 %v171_v21, %v170_v17  ;;  %v182_v23 = vadd.f32 %v181_v22, %v180_v18 }
  0xcc   :  { %v166_v24 = vadd.f32 %v165_v25, %v164_v19  ;;  %v176_v28 = vadd.f32 %v175_v26, %v174_v20 }
  0xcd   :  { %v183_v29 = vrot.slane %v182_v23, 1  ;;  %325 = vrcp.f32 %v172_v27 }
  0xce   :  { %v177_v30 = vrot.slane %v176_v28, 1  ;;  %327 = vrcp.f32 %v166_v24 }
  0xcf   :  { %v184_v31 = vadd.f32 %v183_v29, %v182_v23 }
  0xd0   :  { %v178_v32 = vadd.f32 %v177_v30, %v176_v28 }
  0xd1   :  { %329 = vrcp.f32 %v184_v31 }
  0xd2   :  { %v318_v33 = vpop.eup %317  ;;  %331 = vrcp.f32 %v178_v32 }
  0xd3   :  { %v320_v34 = vpop.eup %319  ;;  %v190_v37 = vmul.f32 %v318_v33, %v426_v35 }
  0xd4   :  { %v186_v39 = vmul.f32 %v320_v34, %v428_v36 }
  0xd5   :  { %v203_v41 = vmul.f32 %v190_v37, %v399_v0 }
  0xd6   :  { %v322_v42 = vpop.eup %321  ;;  %v201_v43 = vmul.f32 %v186_v39, %v404_v2 }
  0xd7   :  { %v324_v44 = vpop.eup %323  ;;  %v192_v45 = vmul.f32 %v322_v42, %v433_v38  ;;  %v221_v46 = vrot.slane %v203_v41, 4 }
  0xd8   :  { %v188_v47 = vmul.f32 %v324_v44, %v436_v40  ;;  %v209_v48 = vrot.slane %v201_v43, 4 }
  0xd9   :  { %v204_v50 = vmul.f32 %v192_v45, %v408_v5  ;;  %v222_v51 = vadd.f32 %v221_v46, %v203_v41 }
  0xda   :  { %v202_v35 = vmul.f32 %v188_v47, %v410_v6  ;;  %v210_v53 = vadd.f32 %v209_v48, %v201_v43  ;;  %v326_v54 = vpop.eup %325 }
  0xdb   :  { %v223_v36 = vrot.slane %v222_v51, 2  ;;  %v227_v55 = vrot.slane %v204_v50, 4  ;;  %v328_v0 = vpop.eup %327  ;;  %v196_v56 = vmul.f32 %v326_v54, %v442_v49 }
  0xdc   :  { %v211_v2 = vrot.slane %v210_v53, 2  ;;  %v215_v57 = vrot.slane %v202_v35, 4  ;;  %v194_v38 = vmul.f32 %v328_v0, %v444_v52 }
  0xdd   :  { %v228_v58 = vadd.f32 %v227_v55, %v204_v50  ;;  %v206_v40 = vmul.f32 %v196_v56, %v414_v9  ;;  %v224_v6 = vadd.f32 %v223_v36, %v222_v51 }
  0xde   :  { %v212_v59 = vadd.f32 %v211_v2, %v210_v53  ;;  %v216_v60 = vadd.f32 %v215_v57, %v202_v35  ;;  %v330_v5 = vpop.eup %329  ;;  %v205_v61 = vmul.f32 %v194_v38, %v416_v10 }
  0xdf   :  { %v229_v63 = vrot.slane %v228_v58, 2  ;;  %v332_v1 = vpop.eup %331  ;;  %v200_v4 = vmul.f32 %v330_v5, %v449_v62  ;;  %v239_v8 = vrot.slane %v206_v40, 4  ;;  %v225_v18 = vrot.slane %v224_v6, 1 }
  0xe0   :  { %v217_v7 = vrot.slane %v216_v60, 2  ;;  %v198_v49 = vmul.f32 %v332_v1, %v452_v3  ;;  %v233_v12 = vrot.slane %v205_v61, 4  ;;  %v213_v15 = vrot.slane %v212_v59, 1 }
  0xe1   :  { %v230_v11 = vadd.f32 %v229_v63, %v228_v58  ;;  %v208_v52 = vmul.f32 %v200_v4, %v420_v13  ;;  %v240_v16 = vadd.f32 %v239_v8, %v206_v40  ;;  %v226_v13 = vadd.f32 %v225_v18, %v224_v6 }
  0xe2   :  { %v218_v9 = vadd.f32 %v217_v7, %v216_v60  ;;  %v207_v17 = vmul.f32 %v198_v49, %v422_v14  ;;  %v234_v10 = vadd.f32 %v233_v12, %v205_v61  ;;  %v214_v3 = vadd.f32 %v213_v15, %v212_v59 }
  0xe3   :  { %v231_v20 = vrot.slane %v230_v11, 1  ;;  %v241_v21 = vrot.slane %v240_v16, 2  ;;  %v251_v22 = vrot.slane %v208_v52, 4 }
  0xe4   :  { %v219_v19 = vrot.slane %v218_v9, 1  ;;  %v235_v62 = vrot.slane %v234_v10, 2  ;;  %v245_v25 = vrot.slane %v207_v17, 4 }
  0xe5   :  { %v242_v27 = vadd.f32 %v241_v21, %v240_v16  ;;  %v252_v23 = vadd.f32 %v251_v22, %v208_v52  ;;  %v232_v29 = vadd.f32 %v231_v20, %v230_v11 }
  0xe6   :  { %v220_v26 = vadd.f32 %v219_v19, %v218_v9  ;;  %v236_v24 = vadd.f32 %v235_v62, %v234_v10  ;;  %v246_v28 = vadd.f32 %v245_v25, %v207_v17 }
  0xe7   :  { %v243_v14 = vrot.slane %v242_v27, 1  ;;  %v253_v30 = vrot.slane %v252_v23, 2 }
  0xe8   :  { %v266_v31 = vsel %vm265_vm0, %v220_v26, %v214_v3  ;;  %v237_v32 = vrot.slane %v236_v24, 1  ;;  %v247_v33 = vrot.slane %v246_v28, 2 }
  0xe9   :  { %v268_v34 = vsel %vm267_vm1, %v226_v13, %v266_v31  ;;  %v254_v37 = vadd.f32 %v253_v30, %v252_v23  ;;  %v244_v43 = vadd.f32 %v243_v14, %v242_v27 }
  0xea   :  { %v270_v39 = vsel %vm269_vm2, %v232_v29, %v268_v34  ;;  %v238_v41 = vadd.f32 %v237_v32, %v236_v24  ;;  %v248_v42 = vadd.f32 %v247_v33, %v246_v28 }
  0xeb   :  { %v255_v44 = vrot.slane %v254_v37, 1 }
  0xec   :  { %v249_v45 = vrot.slane %v248_v42, 1  ;;  %v272_v46 = vsel %vm271_vm3, %v238_v41, %v270_v39 }
  0xed   :  { %v256_v47 = vadd.f32 %v255_v44, %v254_v37  ;;  %v274_v50 = vsel %vm273_vm4, %v244_v43, %v272_v46 }
  0xee   :  { %v250_v48 = vadd.f32 %v249_v45, %v248_v42 }
  0xf0   :  { %v276_v51 = vsel %vm275_vm5, %v250_v48, %v274_v50 }
  0xf1   :  { %v278_v35 = vsel %vm277_vm6, %v256_v47, %v276_v51 }
  0xf2   :  { %280 = vst [vmem:[#allocation5] sm:$0xff] %v278_v35 }
  0xf3   :  { %364 = shalt.err (!%p361_p9)
}
  0xf4   :  { %290 = dma.vmem_to_hbm [thread:$0]  %s288_s1, 128, %s479_s2, [#allocation4]  }
  0xf5   :  { %375 = dma.done.wait [#allocation4], 128  }
  0xf6   :  { %376 = vsyncadd [#allocation4], 4294967168 }
  0xf7   :  { %294 = vsyncpa [#allocation3], 1 }
  0xf8   :  { %295 = vsyncpa [#allocation4], 1 }

</bundles_post_ra>
